<compile_context>
chip_gen: v5e
topology: v5e:2x2
jax: 0.10.0
libtpu: 0.0.40
codegen_flags: <defaults>
</compile_context>

<pallas_src>
import numpy as np
import jax
import jax.numpy as jnp
from jax import lax
from jax.experimental import pallas as pl
from jax.experimental.pallas import tpu as pltpu

# ---------------- static configuration ----------------
N, CIN, H, W = 2, 16, 16, 16          # batch, in_channels, spatial
COUT = 32                             # out_channels
RATIO = 4                             # internal_ratio
CINT = CIN // RATIO                   # internal (projection) channels = 4
K = 3                                 # maxpool / conv2 kernel size
PAD = 1                               # padding for maxpool and conv2
HO, WO = H // 2, W // 2               # downsampled spatial size = 8, 8
EPS = 1e-5                            # BatchNorm eps

M = N * HO                            # matmul M dim (batch folded into rows) = 16
LW = WO * CIN                         # pixel-major lane width for 16-ch tiles = 128
LOUT = 2 * LW                         # grouped lane width for 32-ch output   = 256
LMID = WO * CINT                      # lane width for internal tiles         = 32
NTAP = K * K                          # pooling window taps                   = 9


# ---------------- fused Pallas kernel ----------------
def _fused_kernel(planes_ref, base_ref, a1_ref, a2_ref, a3_ref, bias_ref,
                  out_ref, midx_ref):
    """Whole DownsamplingBottleneck forward for the full (folded) batch.

    planes_ref : (144, 128) f32  one aligned 16-row plane per pooling tap;
                 row t*16 + n*8 + oh, lane ow*16 + c  == xpad[n, 2*oh+dy, 2*ow+dx, c]
                 with t = dy*3 + dx and xpad the -inf padded NHWC input.
    base_ref   : (16, 128) int32 PyTorch flat base index (2*oh-1)*W + (2*ow-1).
    a1_ref     : (512, 32)  conv1 weight, BN-scale folded, block-diag expanded.
    a2_ref     : (96, 32)   conv2 weight, BN folded, banded and dy-stacked (one matmul).
    a3_ref     : (32, 256)  conv3 weight, BN folded, expanded to grouped out lanes.
    bias_ref   : (3, 256)   BN shifts (rows: conv1, conv2, conv3; lane layouts match).
    out_ref    : (16, 256)  f32, row n*8+oh, lane g*128+ow*16+cg  (channel g*16+cg).
    midx_ref   : (16, 128)  int32 maxpool argmax (PyTorch flat h*W+w convention).
    """
    base_idx = base_ref[...]                              # (16, 128) int32

    # --- main branch: 3x3 / stride-2 / pad-1 maxpool with indices ---
    best = None
    bidx = None
    taps = {}
    for dy in range(K):
        for dx in range(K):
            t = dy * K + dx
            v = planes_ref[t * M:(t + 1) * M, :]          # aligned (16, 128) slice
            if dy >= 1 and dx >= 1:                       # reuse as conv1 taps
                taps[(dy - 1, dx - 1)] = v
            if best is None:
                best = v
                bidx = base_idx + (dy * W + dx)
            else:
                take = v > best                           # first-max tie-break
                best = jnp.where(take, v, best)
                bidx = jnp.where(take, base_idx + (dy * W + dx), bidx)
    midx_ref[...] = bidx

    # --- ext_conv1: 2x2 / stride-2 projection (+ folded BN + ReLU) ---
    p1 = jnp.concatenate([taps[(0, 0)], taps[(0, 1)],
                          taps[(1, 0)], taps[(1, 1)]], axis=1)          # (16, 512)
    b1 = bias_ref[0:1, 0:LMID]                                          # (1, 32)
    ext1 = jnp.maximum(
        jnp.dot(p1, a1_ref[...], preferred_element_type=jnp.float32) + b1, 0.0)  # (16, 32)

    # --- ext_conv2: 3x3 / pad-1 conv (+ folded BN + ReLU), ONE fused matmul ---
    # Row (oh) shifts via pltpu.roll on the sublane axis (XLU) + a single iota mask;
    # column (ow) shifts are encoded in the banded a2 blocks.
    oh = lax.broadcasted_iota(jnp.int32, (M, LMID), 0) & (HO - 1)       # oh within batch
    up = jnp.where(oh == 0, 0.0, pltpu.roll(ext1, shift=1, axis=0))     # ext1[oh-1]
    down = jnp.where(oh == HO - 1, 0.0,
                     pltpu.roll(ext1, shift=M - 1, axis=0))             # ext1[oh+1]
    p2 = jnp.concatenate([up, ext1, down], axis=1)                      # (16, 96)
    b2 = bias_ref[1:2, 0:LMID]
    ext2 = jnp.maximum(
        jnp.dot(p2, a2_ref[...], preferred_element_type=jnp.float32) + b2, 0.0)  # (16, 32)

    # --- ext_conv3: 1x1 expansion (+ folded BN + ReLU), grouped output lanes ---
    b3 = bias_ref[2:3, :]
    ext3 = jnp.maximum(
        jnp.dot(ext2, a3_ref[...], preferred_element_type=jnp.float32) + b3, 0.0)  # (16, 256)

    # --- ext_regul = Dropout2d(p=0.0) -> identity (inference) ---
    # TODO(synk): Dropout2d with p > 0 (random channel zeroing) not implemented.

    # --- main-branch zero-pad channel concat + residual add + final ReLU ---
    main_padded = jnp.concatenate([best, jnp.zeros((M, LW), jnp.float32)], axis=1)  # (16, 256)
    out_ref[...] = jnp.maximum(main_padded + ext3, 0.0)


# ---------------- parameter preparation (BN folding + weight expansion) ----------------
def prepare_params(params):
    """Fold BN scales into the conv weights, expand them into the lane-fused matrices
    the fused kernel consumes, and build the constant maxpool base-index table.
    Done once, outside the hot path."""
    (w1, sc1, sh1, w2, sc2, sh2, w3, sc3, sh3) = params
    sc1v, sh1v = sc1.reshape(-1), sh1.reshape(-1)     # (CINT,)
    sc2v, sh2v = sc2.reshape(-1), sh2.reshape(-1)     # (CINT,)
    sc3v, sh3v = sc3.reshape(-1), sh3.reshape(-1)     # (COUT,)
    eye_w = jnp.eye(WO, dtype=jnp.float32)

    # conv1 (HWIO 2x2xCINxCINT): rows (tap, ow, cin), cols (ow', cint), diag over ow
    w1f = (w1 * sc1v).reshape(4, CIN, CINT)
    a1 = (w1f[:, None, :, None, :] * eye_w[None, :, None, :, None]
          ).reshape(4 * WO * CIN, LMID)                                 # (512, 32)

    # conv2 (HWIO 3x3xCINTxCINT): per-kh banded block matrices over ow (kw shifts),
    # stacked along rows (dy-major) so the kernel does ONE (16,96)@(96,32) matmul.
    w2f = w2 * sc2v
    a2_blocks = []
    for dy in range(K):
        acc = jnp.zeros((LMID, LMID), jnp.float32)
        for dx in range(K):
            acc = acc + jnp.kron(jnp.eye(WO, k=1 - dx, dtype=jnp.float32), w2f[dy, dx])
        a2_blocks.append(acc)
    a2 = jnp.concatenate(a2_blocks, axis=0)                             # (96, 32)

    # conv3 (1x1 CINT->COUT): rows (ow, cint), cols grouped (g, ow', cg), diag over ow
    w3f = w3.reshape(CINT, COUT) * sc3v
    w3g = w3f.reshape(CINT, COUT // CIN, CIN)                           # (4, 2, 16)
    a3 = (eye_w[:, None, None, :, None] * w3g[None, :, :, None, :]
          ).reshape(LMID, LOUT)                                         # (32, 256)

    # BN shifts, laid out to match each matmul's output lanes, one (3, 256) operand
    b1 = jnp.tile(sh1v, WO)                                             # lane ow*4+e
    b2 = jnp.tile(sh2v, WO)
    b3 = jnp.broadcast_to(sh3v.reshape(COUT // CIN, 1, CIN),
                          (COUT // CIN, WO, CIN)).reshape(LOUT)         # lane g*128+ow*16+cg
    pad_w = LOUT - LMID
    bias_cat = jnp.stack([jnp.pad(b1, (0, pad_w)),
                          jnp.pad(b2, (0, pad_w)), b3], axis=0)         # (3, 256)

    # Host-precomputed maxpool base indices (PyTorch flat ih*W+iw convention).
    base_np = ((2 * np.arange(HO) - PAD) * W)[:, None, None] \
        + (2 * np.arange(WO) - PAD)[None, :, None]
    base_np = np.broadcast_to(base_np, (HO, WO, CIN)).reshape(HO, LW)
    base_idx = jnp.asarray(np.tile(base_np, (N, 1)).astype(np.int32))   # (16, 128)

    return a1, a2, a3, bias_cat, base_idx


# ---------------- wrapper ----------------
def downsampling_bottleneck(x_nchw, prepared):
    a1, a2, a3, bias_cat, base_idx = prepared
    x = jnp.transpose(x_nchw, (0, 2, 3, 1)).astype(jnp.float32)         # NHWC

    # Aligned per-tap repack of the -inf padded input: one 16-row (N*HO) plane per
    # pooling tap, so every in-kernel slice starts at a multiple of 8 sublanes.
    # planes[t*16 + n*8 + oh, ow*16 + c] = xpad[n, 2*oh+dy, 2*ow+dx, c],  t = dy*3+dx.
    xpad = jnp.pad(x, ((0, 0), (PAD, PAD), (PAD, PAD), (0, 0)),
                   constant_values=-jnp.inf)                            # (N, 18, 18, 16)
    taps = [xpad[:, dy:dy + 2 * HO:2, dx:dx + 2 * WO:2, :]              # (N, 8, 8, 16)
            for dy in range(K) for dx in range(K)]
    planes2d = jnp.stack(taps, axis=0).reshape(NTAP * M, LW)            # (144, 128)

    out2d, midx2d = pl.pallas_call(
        _fused_kernel,
        out_shape=(jax.ShapeDtypeStruct((M, LOUT), jnp.float32),
                   jax.ShapeDtypeStruct((M, LW), jnp.int32)),
        in_specs=[pl.BlockSpec(memory_space=pltpu.MemorySpace.VMEM)] * 6,
        out_specs=(pl.BlockSpec(memory_space=pltpu.MemorySpace.VMEM),
                   pl.BlockSpec(memory_space=pltpu.MemorySpace.VMEM)),
        compiler_params=pltpu.CompilerParams(
            # Let XLA fold the pad/strided-slice/stack repack into the planes operand.
            allow_input_fusion=[True, False, False, False, False, False]),
    )(planes2d, base_idx, a1, a2, a3, bias_cat)

    # decode grouped lane layouts back to NCHW
    out_nchw = jnp.transpose(out2d.reshape(N, HO, 2, WO, CIN),
                             (0, 2, 4, 1, 3)).reshape(N, COUT, HO, WO)
    midx_nchw = jnp.transpose(midx2d.reshape(N, HO, WO, CIN), (0, 3, 1, 2))
    return out_nchw, midx_nchw     # indices returned as int32 (PyTorch uses int64)


# ---------------- deterministic parameter init + references ----------------
def _bn_fold(kg, kb, km, kv, c):
    gamma = 1.0 + 0.1 * jax.random.normal(kg, (c,), jnp.float32)
    beta = 0.1 * jax.random.normal(kb, (c,), jnp.float32)
    mean = 0.1 * jax.random.normal(km, (c,), jnp.float32)
    var = 1.0 + 0.1 * jax.random.uniform(kv, (c,), jnp.float32)
    scale = gamma / jnp.sqrt(var + EPS)
    shift = beta - mean * scale
    return scale.reshape(1, c), shift.reshape(1, c)


def make_params(key):
    ks = jax.random.split(key, 16)
    w1 = 0.25 * jax.random.normal(ks[0], (2, 2, CIN, CINT), jnp.float32)      # HWIO
    w2 = 0.25 * jax.random.normal(ks[1], (K, K, CINT, CINT), jnp.float32)     # HWIO
    w3 = 0.25 * jax.random.normal(ks[2], (1, 1, CINT, COUT), jnp.float32)     # HWIO
    sc1, sh1 = _bn_fold(ks[3], ks[4], ks[5], ks[6], CINT)
    sc2, sh2 = _bn_fold(ks[7], ks[8], ks[9], ks[10], CINT)
    sc3, sh3 = _bn_fold(ks[11], ks[12], ks[13], ks[14], COUT)
    return (w1, sc1, sh1, w2, sc2, sh2, w3, sc3, sh3)


def reference(x_nchw, params):
    (w1, sc1, sh1, w2, sc2, sh2, w3, sc3, sh3) = params
    x = jnp.transpose(x_nchw, (0, 2, 3, 1))
    main = lax.reduce_window(x, -jnp.inf, lax.max, (1, K, K, 1), (1, 2, 2, 1),
                             [(0, 0), (PAD, PAD), (PAD, PAD), (0, 0)])
    dn = ('NHWC', 'HWIO', 'NHWC')
    e = lax.conv_general_dilated(x, w1, (2, 2), 'VALID', dimension_numbers=dn)
    e = jnp.maximum(e * sc1 + sh1, 0.0)
    e = lax.conv_general_dilated(e, w2, (1, 1), [(PAD, PAD), (PAD, PAD)],
                                 dimension_numbers=dn)
    e = jnp.maximum(e * sc2 + sh2, 0.0)
    e = lax.conv_general_dilated(e, w3, (1, 1), 'VALID', dimension_numbers=dn)
    e = jnp.maximum(e * sc3 + sh3, 0.0)
    mainp = jnp.pad(main, ((0, 0), (0, 0), (0, 0), (0, COUT - CIN)))
    out = jnp.maximum(mainp + e, 0.0)
    return jnp.transpose(out, (0, 3, 1, 2))


def reference_indices(x_nchw):
    xn = np.asarray(x_nchw)
    idx = np.zeros((N, CIN, HO, WO), np.int32)
    for n in range(N):
        for c in range(CIN):
            for oh_ in range(HO):
                for ow_ in range(WO):
                    best, bi = -np.inf, 0
                    for dy in range(K):
                        for dx in range(K):
                            ih = 2 * oh_ - PAD + dy
                            iw = 2 * ow_ - PAD + dx
                            if 0 <= ih < H and 0 <= iw < W:
                                v = xn[n, c, ih, iw]
                                if v > best:
                                    best, bi = v, ih * W + iw
                    idx[n, c, oh_, ow_] = bi
    return idx


if __name__ == "__main__":
    key = jax.random.PRNGKey(0)
    kx, kp = jax.random.split(key)
    x = jax.random.normal(kx, (N, CIN, H, W), jnp.float32)     # NCHW, like PyTorch
    params = make_params(kp)
    prepared = prepare_params(params)                          # one-time weight prep

    fwd = jax.jit(lambda xx: downsampling_bottleneck(xx, prepared))
    out, midx = fwd(x)
    jax.block_until_ready((out, midx))

    ref_out = reference(x, params)
    np.testing.assert_allclose(np.asarray(out), np.asarray(ref_out),
                               rtol=5e-3, atol=5e-3)
    np.testing.assert_array_equal(np.asarray(midx), reference_indices(x))
    print("KERNEL_OK")
</pallas_src>

<mosaic_0001>
module attributes {stable_mosaic.version = 11 : i64} {
  func.func @_fused_kernel(%arg0: memref<144x128xf32, #tpu.memory_space<vmem>>, %arg1: memref<16x128xi32, #tpu.memory_space<vmem>>, %arg2: memref<512x32xf32, #tpu.memory_space<vmem>>, %arg3: memref<96x32xf32, #tpu.memory_space<vmem>>, %arg4: memref<32x256xf32, #tpu.memory_space<vmem>>, %arg5: memref<3x256xf32, #tpu.memory_space<vmem>>, %arg6: memref<16x256xf32, #tpu.memory_space<vmem>>, %arg7: memref<16x128xi32, #tpu.memory_space<vmem>>) attributes {dimension_semantics = [], scalar_prefetch = 0 : i64, scratch_operands = 0 : i64, tpu.core_type = #tpu.core_type<tc>} {
    %c0 = arith.constant 0 : index
    %c0_0 = arith.constant 0 : index
    %0 = vector.load %arg1[%c0, %c0_0] : memref<16x128xi32, #tpu.memory_space<vmem>>, vector<16x128xi32>
    %c0_1 = arith.constant 0 : index
    %c0_2 = arith.constant 0 : index
    %1 = vector.load %arg0[%c0_1, %c0_2] : memref<144x128xf32, #tpu.memory_space<vmem>>, vector<16x128xf32>
    %c0_i32 = arith.constant 0 : i32
    %2 = vector.broadcast %c0_i32 : i32 to vector<16x128xi32>
    %3 = arith.addi %0, %2 : vector<16x128xi32>
    %c16 = arith.constant 16 : index
    %c0_3 = arith.constant 0 : index
    %4 = vector.load %arg0[%c16, %c0_3] : memref<144x128xf32, #tpu.memory_space<vmem>>, vector<16x128xf32>
    %5 = arith.cmpf ogt, %4, %1 : vector<16x128xf32>
    %6 = arith.select %5, %4, %1 : vector<16x128xi1>, vector<16x128xf32>
    %c1_i32 = arith.constant 1 : i32
    %7 = vector.broadcast %c1_i32 : i32 to vector<16x128xi32>
    %8 = arith.addi %0, %7 : vector<16x128xi32>
    %9 = arith.select %5, %8, %3 : vector<16x128xi1>, vector<16x128xi32>
    %c32 = arith.constant 32 : index
    %c0_4 = arith.constant 0 : index
    %10 = vector.load %arg0[%c32, %c0_4] : memref<144x128xf32, #tpu.memory_space<vmem>>, vector<16x128xf32>
    %11 = arith.cmpf ogt, %10, %6 : vector<16x128xf32>
    %12 = arith.select %11, %10, %6 : vector<16x128xi1>, vector<16x128xf32>
    %c2_i32 = arith.constant 2 : i32
    %13 = vector.broadcast %c2_i32 : i32 to vector<16x128xi32>
    %14 = arith.addi %0, %13 : vector<16x128xi32>
    %15 = arith.select %11, %14, %9 : vector<16x128xi1>, vector<16x128xi32>
    %c48 = arith.constant 48 : index
    %c0_5 = arith.constant 0 : index
    %16 = vector.load %arg0[%c48, %c0_5] : memref<144x128xf32, #tpu.memory_space<vmem>>, vector<16x128xf32>
    %17 = arith.cmpf ogt, %16, %12 : vector<16x128xf32>
    %18 = arith.select %17, %16, %12 : vector<16x128xi1>, vector<16x128xf32>
    %c16_i32 = arith.constant 16 : i32
    %19 = vector.broadcast %c16_i32 : i32 to vector<16x128xi32>
    %20 = arith.addi %0, %19 : vector<16x128xi32>
    %21 = arith.select %17, %20, %15 : vector<16x128xi1>, vector<16x128xi32>
    %c64 = arith.constant 64 : index
    %c0_6 = arith.constant 0 : index
    %22 = vector.load %arg0[%c64, %c0_6] : memref<144x128xf32, #tpu.memory_space<vmem>>, vector<16x128xf32>
    %23 = arith.cmpf ogt, %22, %18 : vector<16x128xf32>
    %24 = arith.select %23, %22, %18 : vector<16x128xi1>, vector<16x128xf32>
    %c17_i32 = arith.constant 17 : i32
    %25 = vector.broadcast %c17_i32 : i32 to vector<16x128xi32>
    %26 = arith.addi %0, %25 : vector<16x128xi32>
    %27 = arith.select %23, %26, %21 : vector<16x128xi1>, vector<16x128xi32>
    %c80 = arith.constant 80 : index
    %c0_7 = arith.constant 0 : index
    %28 = vector.load %arg0[%c80, %c0_7] : memref<144x128xf32, #tpu.memory_space<vmem>>, vector<16x128xf32>
    %29 = arith.cmpf ogt, %28, %24 : vector<16x128xf32>
    %30 = arith.select %29, %28, %24 : vector<16x128xi1>, vector<16x128xf32>
    %c18_i32 = arith.constant 18 : i32
    %31 = vector.broadcast %c18_i32 : i32 to vector<16x128xi32>
    %32 = arith.addi %0, %31 : vector<16x128xi32>
    %33 = arith.select %29, %32, %27 : vector<16x128xi1>, vector<16x128xi32>
    %c96 = arith.constant 96 : index
    %c0_8 = arith.constant 0 : index
    %34 = vector.load %arg0[%c96, %c0_8] : memref<144x128xf32, #tpu.memory_space<vmem>>, vector<16x128xf32>
    %35 = arith.cmpf ogt, %34, %30 : vector<16x128xf32>
    %36 = arith.select %35, %34, %30 : vector<16x128xi1>, vector<16x128xf32>
    %c32_i32 = arith.constant 32 : i32
    %37 = vector.broadcast %c32_i32 : i32 to vector<16x128xi32>
    %38 = arith.addi %0, %37 : vector<16x128xi32>
    %39 = arith.select %35, %38, %33 : vector<16x128xi1>, vector<16x128xi32>
    %c112 = arith.constant 112 : index
    %c0_9 = arith.constant 0 : index
    %40 = vector.load %arg0[%c112, %c0_9] : memref<144x128xf32, #tpu.memory_space<vmem>>, vector<16x128xf32>
    %41 = arith.cmpf ogt, %40, %36 : vector<16x128xf32>
    %42 = arith.select %41, %40, %36 : vector<16x128xi1>, vector<16x128xf32>
    %c33_i32 = arith.constant 33 : i32
    %43 = vector.broadcast %c33_i32 : i32 to vector<16x128xi32>
    %44 = arith.addi %0, %43 : vector<16x128xi32>
    %45 = arith.select %41, %44, %39 : vector<16x128xi1>, vector<16x128xi32>
    %c128 = arith.constant 128 : index
    %c0_10 = arith.constant 0 : index
    %46 = vector.load %arg0[%c128, %c0_10] : memref<144x128xf32, #tpu.memory_space<vmem>>, vector<16x128xf32>
    %47 = arith.cmpf ogt, %46, %42 : vector<16x128xf32>
    %48 = arith.select %47, %46, %42 : vector<16x128xi1>, vector<16x128xf32>
    %c34_i32 = arith.constant 34 : i32
    %49 = vector.broadcast %c34_i32 : i32 to vector<16x128xi32>
    %50 = arith.addi %0, %49 : vector<16x128xi32>
    %51 = arith.select %47, %50, %45 : vector<16x128xi1>, vector<16x128xi32>
    %c0_11 = arith.constant 0 : index
    %c0_12 = arith.constant 0 : index
    %52 = vector.load %arg7[%c0_11, %c0_12] : memref<16x128xi32, #tpu.memory_space<vmem>>, vector<16x128xi32>
    tpu.vector_store %arg7[%c0_11, %c0_12], %51 {strides = array<i32>} : memref<16x128xi32, #tpu.memory_space<vmem>>, vector<16x128xi32>,
    %53 = tpu.concatenate %22, %28, %40, %46 in 1 : vector<16x128xf32>, vector<16x128xf32>, vector<16x128xf32>, vector<16x128xf32> -> vector<16x512xf32>
    %c0_13 = arith.constant 0 : index
    %c0_14 = arith.constant 0 : index
    %54 = vector.load %arg5[%c0_13, %c0_14] : memref<3x256xf32, #tpu.memory_space<vmem>>, vector<1x32xf32>
    %c0_15 = arith.constant 0 : index
    %c0_16 = arith.constant 0 : index
    %55 = vector.load %arg2[%c0_15, %c0_16] : memref<512x32xf32, #tpu.memory_space<vmem>>, vector<512x32xf32>
    %cst = arith.constant dense<0.000000e+00> : vector<16x32xf32>
    %56 = tpu.matmul %53, %55, %cst {dimension_numbers = #tpu.dot_dimension_numbers<[1], [0], [0], [1], [0, 0, 1, 1], [], []>} : vector<16x512xf32>, vector<512x32xf32>, vector<16x32xf32> -> vector<16x32xf32>
    %57 = vector.broadcast %54 : vector<1x32xf32> to vector<16x32xf32>
    %58 = arith.addf %56, %57 : vector<16x32xf32>
    %cst_17 = arith.constant 0.000000e+00 : f32
    %59 = vector.broadcast %cst_17 : f32 to vector<16x32xf32>
    %60 = arith.maximumf %58, %59 : vector<16x32xf32>
    %61 = tpu.iota {dimensions = array<i32: 0>} : vector<16x32xi32>
    %c7_i32 = arith.constant 7 : i32
    %62 = vector.broadcast %c7_i32 : i32 to vector<16x32xi32>
    %63 = arith.andi %61, %62 : vector<16x32xi32>
    %c0_i32_18 = arith.constant 0 : i32
    %64 = vector.broadcast %c0_i32_18 : i32 to vector<16x32xi32>
    %65 = arith.cmpi eq, %63, %64 : vector<16x32xi32>
    %c1_i32_19 = arith.constant 1 : i32
    %66 = tpu.dynamic_rotate %60 by %c1_i32_19 dim 0 : vector<16x32xf32>, i32 -> vector<16x32xf32>
    %cst_20 = arith.constant 0.000000e+00 : f32
    %67 = vector.broadcast %cst_20 : f32 to vector<16x32xf32>
    %68 = arith.select %65, %67, %66 : vector<16x32xi1>, vector<16x32xf32>
    %c7_i32_21 = arith.constant 7 : i32
    %69 = vector.broadcast %c7_i32_21 : i32 to vector<16x32xi32>
    %70 = arith.cmpi eq, %63, %69 : vector<16x32xi32>
    %c15_i32 = arith.constant 15 : i32
    %71 = tpu.dynamic_rotate %60 by %c15_i32 dim 0 : vector<16x32xf32>, i32 -> vector<16x32xf32>
    %cst_22 = arith.constant 0.000000e+00 : f32
    %72 = vector.broadcast %cst_22 : f32 to vector<16x32xf32>
    %73 = arith.select %70, %72, %71 : vector<16x32xi1>, vector<16x32xf32>
    %74 = tpu.concatenate %68, %60, %73 in 1 : vector<16x32xf32>, vector<16x32xf32>, vector<16x32xf32> -> vector<16x96xf32>
    %c1 = arith.constant 1 : index
    %c0_23 = arith.constant 0 : index
    %75 = vector.load %arg5[%c1, %c0_23] : memref<3x256xf32, #tpu.memory_space<vmem>>, vector<1x32xf32>
    %c0_24 = arith.constant 0 : index
    %c0_25 = arith.constant 0 : index
    %76 = vector.load %arg3[%c0_24, %c0_25] : memref<96x32xf32, #tpu.memory_space<vmem>>, vector<96x32xf32>
    %cst_26 = arith.constant dense<0.000000e+00> : vector<16x32xf32>
    %77 = tpu.matmul %74, %76, %cst_26 {dimension_numbers = #tpu.dot_dimension_numbers<[1], [0], [0], [1], [0, 0, 1, 1], [], []>} : vector<16x96xf32>, vector<96x32xf32>, vector<16x32xf32> -> vector<16x32xf32>
    %78 = vector.broadcast %75 : vector<1x32xf32> to vector<16x32xf32>
    %79 = arith.addf %77, %78 : vector<16x32xf32>
    %cst_27 = arith.constant 0.000000e+00 : f32
    %80 = vector.broadcast %cst_27 : f32 to vector<16x32xf32>
    %81 = arith.maximumf %79, %80 : vector<16x32xf32>
    %c2 = arith.constant 2 : index
    %c0_28 = arith.constant 0 : index
    %82 = vector.load %arg5[%c2, %c0_28] : memref<3x256xf32, #tpu.memory_space<vmem>>, vector<1x256xf32>
    %c0_29 = arith.constant 0 : index
    %c0_30 = arith.constant 0 : index
    %83 = vector.load %arg4[%c0_29, %c0_30] : memref<32x256xf32, #tpu.memory_space<vmem>>, vector<32x256xf32>
    %cst_31 = arith.constant dense<0.000000e+00> : vector<16x256xf32>
    %84 = tpu.matmul %81, %83, %cst_31 {dimension_numbers = #tpu.dot_dimension_numbers<[1], [0], [0], [1], [0, 0, 1, 1], [], []>} : vector<16x32xf32>, vector<32x256xf32>, vector<16x256xf32> -> vector<16x256xf32>
    %85 = vector.broadcast %82 : vector<1x256xf32> to vector<16x256xf32>
    %86 = arith.addf %84, %85 : vector<16x256xf32>
    %cst_32 = arith.constant 0.000000e+00 : f32
    %87 = vector.broadcast %cst_32 : f32 to vector<16x256xf32>
    %88 = arith.maximumf %86, %87 : vector<16x256xf32>
    %cst_33 = arith.constant 0.000000e+00 : f32
    %89 = vector.broadcast %cst_33 : f32 to vector<16x128xf32>
    %90 = tpu.concatenate %48, %89 in 1 : vector<16x128xf32>, vector<16x128xf32> -> vector<16x256xf32>
    %91 = arith.addf %90, %88 : vector<16x256xf32>
    %cst_34 = arith.constant 0.000000e+00 : f32
    %92 = vector.broadcast %cst_34 : f32 to vector<16x256xf32>
    %93 = arith.maximumf %91, %92 : vector<16x256xf32>
    %c0_35 = arith.constant 0 : index
    %c0_36 = arith.constant 0 : index
    %94 = vector.load %arg6[%c0_35, %c0_36] : memref<16x256xf32, #tpu.memory_space<vmem>>, vector<16x256xf32>
    tpu.vector_store %arg6[%c0_35, %c0_36], %93 {strides = array<i32>} : memref<16x256xf32, #tpu.memory_space<vmem>>, vector<16x256xf32>,
    return
  }
}

</mosaic_0001>

<bundles_post_ra>
// kernel: _lambda_.1
= control target key start
LH: loop header
LB: loop body
LE: loop exit
PB: predicated region body
PF: predicated region fallthrough
CT: control target
= control target key end

     0   :  { %s476_s16 = smov 32   ;;  %s477_s17 = smov 64   ;;  %s959_s2 = inlined_call_operand.vmem [shape: f32[512,32], index: 2, kind: input, shape index: {}]   ;;  %s960_s1 = inlined_call_operand.vmem [shape: s32[16,128], index: 1, kind: input, shape index: {}]   ;;  %s961_s0 = inlined_call_operand.vmem [shape: f32[144,128], index: 0, kind: input, shape index: {}]   ;;  %s962_s5 = inlined_call_operand.vmem [shape: f32[3,256], index: 5, kind: input, shape index: {}]   ;;  %s963_s3 = inlined_call_operand.vmem [shape: f32[96,32], index: 3, kind: input, shape index: {}]   ;;  %s964_s4 = inlined_call_operand.vmem [shape: f32[32,256], index: 4, kind: input, shape index: {}]   ;;  %s965_s7 = inlined_call_operand.vmem [shape: s32[16,128], index: 7, kind: output, shape index: {1}]   ;;  %s966_s6 = inlined_call_operand.vmem [shape: f32[16,256], index: 6, kind: output, shape index: {0}]  }
   0x1   :  { %v159_v0 = vld [vmem:[%s959_s2 + $0x178] sm:$0xff]  ;;  %v158_v2 = vld [vmem:[%s959_s2 + $0x170] sm:$0xff]  ;;  %v157_v6 = vld [vmem:[%s959_s2 + $0x168] sm:$0xff] }
   0x2   :  { %v127_v1 = vld [vmem:[%s959_s2 + $0x78] sm:$0xff]  ;;  %223 = vmatpush.msra.mxu2 %v159_v0  ;;  %v126_v4 = vld [vmem:[%s959_s2 + $0x70] sm:$0xff]  ;;  %v125_v8 = vld [vmem:[%s959_s2 + $0x68] sm:$0xff] }
   0x3   :  { %177 = vmatpush.msra.mxu0 %v127_v1  ;;  %v175_v3 = vld [vmem:[%s959_s2 + $0x1f8] sm:$0xff]  ;;  %v174_v7 = vld [vmem:[%s959_s2 + $0x1f0] sm:$0xff]  ;;  %v173_v10 = vld [vmem:[%s959_s2 + $0x1e8] sm:$0xff] }
   0x4   :  { %v143_v5 = vld [vmem:[%s959_s2 + $0xf8] sm:$0xff]  ;;  %246 = vmatpush.msra.mxu3 %v175_v3  ;;  %224 = vmatpush.msra.mxu2 %v158_v2  ;;  %v142_v9 = vld [vmem:[%s959_s2 + $0xf0] sm:$0xff]  ;;  %v156_v11 = vld [vmem:[%s959_s2 + $0x160] sm:$0xff] }
   0x5   :  { %200 = vmatpush.msra.mxu1 %v143_v5  ;;  %178 = vmatpush.msra.mxu0 %v126_v4  ;;  %v124_v12 = vld [vmem:[%s959_s2 + $0x60] sm:$0xff]  ;;  %v141_v13 = vld [vmem:[%s959_s2 + $0xe8] sm:$0xff]  ;;  %v155_v16 = vld [vmem:[%s959_s2 + $0x158] sm:$0xff] }
   0x6   :  { %247 = vmatpush.msra.mxu3 %v174_v7  ;;  %225 = vmatpush.msra.mxu2 %v157_v6  ;;  %v172_v14 = vld [vmem:[%s959_s2 + $0x1e0] sm:$0xff]  ;;  %v123_v17 = vld [vmem:[%s959_s2 + $0x58] sm:$0xff]  ;;  %v154_v20 = vld [vmem:[%s959_s2 + $0x150] sm:$0xff] }
   0x7   :  { %201 = vmatpush.msra.mxu1 %v142_v9  ;;  %179 = vmatpush.msra.mxu0 %v125_v8  ;;  %v140_v15 = vld [vmem:[%s959_s2 + $0xe0] sm:$0xff]  ;;  %v171_v18 = vld [vmem:[%s959_s2 + $0x1d8] sm:$0xff]  ;;  %v122_v21 = vld [vmem:[%s959_s2 + $0x50] sm:$0xff] }
   0x8   :  { %248 = vmatpush.msra.mxu3 %v173_v10  ;;  %226 = vmatpush.msra.mxu2 %v156_v11  ;;  %v139_v19 = vld [vmem:[%s959_s2 + $0xd8] sm:$0xff]  ;;  %v170_v22 = vld [vmem:[%s959_s2 + $0x1d0] sm:$0xff]  ;;  %v153_v24 = vld [vmem:[%s959_s2 + $0x148] sm:$0xff] }
   0x9   :  { %202 = vmatpush.msra.mxu1 %v141_v13  ;;  %180 = vmatpush.msra.mxu0 %v124_v12  ;;  %v138_v23 = vld [vmem:[%s959_s2 + $0xd0] sm:$0xff]  ;;  %v121_v25 = vld [vmem:[%s959_s2 + $0x48] sm:$0xff]  ;;  %v152_v28 = vld [vmem:[%s959_s2 + $0x140] sm:$0xff] }
   0xa   :  { %249 = vmatpush.msra.mxu3 %v172_v14  ;;  %227 = vmatpush.msra.mxu2 %v155_v16  ;;  %v169_v26 = vld [vmem:[%s959_s2 + $0x1c8] sm:$0xff]  ;;  %v120_v29 = vld [vmem:[%s959_s2 + $0x40] sm:$0xff]  ;;  %v151_v32 = vld [vmem:[%s959_s2 + $0x138] sm:$0xff] }
   0xb   :  { %203 = vmatpush.msra.mxu1 %v140_v15  ;;  %181 = vmatpush.msra.mxu0 %v123_v17  ;;  %v137_v27 = vld [vmem:[%s959_s2 + $0xc8] sm:$0xff]  ;;  %v168_v30 = vld [vmem:[%s959_s2 + $0x1c0] sm:$0xff]  ;;  %v119_v33 = vld [vmem:[%s959_s2 + $0x38] sm:$0xff] }
   0xc   :  { %250 = vmatpush.msra.mxu3 %v171_v18  ;;  %228 = vmatpush.msra.mxu2 %v154_v20  ;;  %v136_v31 = vld [vmem:[%s959_s2 + $0xc0] sm:$0xff]  ;;  %v167_v34 = vld [vmem:[%s959_s2 + $0x1b8] sm:$0xff]  ;;  %v150_v36 = vld [vmem:[%s959_s2 + $0x130] sm:$0xff] }
   0xd   :  { %204 = vmatpush.msra.mxu1 %v139_v19  ;;  %182 = vmatpush.msra.mxu0 %v122_v21  ;;  %v135_v35 = vld [vmem:[%s959_s2 + $0xb8] sm:$0xff]  ;;  %v118_v37 = vld [vmem:[%s959_s2 + $0x30] sm:$0xff]  ;;  %v149_v40 = vld [vmem:[%s959_s2 + $0x128] sm:$0xff] }
   0xe   :  { %251 = vmatpush.msra.mxu3 %v170_v22  ;;  %229 = vmatpush.msra.mxu2 %v153_v24  ;;  %v166_v38 = vld [vmem:[%s959_s2 + $0x1b0] sm:$0xff]  ;;  %v117_v41 = vld [vmem:[%s959_s2 + $0x28] sm:$0xff]  ;;  %v148_v42 = vld [vmem:[%s959_s2 + $0x120] sm:$0xff] }
   0xf   :  { %205 = vmatpush.msra.mxu1 %v138_v23  ;;  %183 = vmatpush.msra.mxu0 %v121_v25  ;;  %v134_v39 = vld [vmem:[%s959_s2 + $0xb0] sm:$0xff]  ;;  %v165_v43 = vld [vmem:[%s959_s2 + $0x1a8] sm:$0xff]  ;;  %v116_v44 = vld [vmem:[%s959_s2 + $0x20] sm:$0xff] }
  0x10   :  { %252 = vmatpush.msra.mxu3 %v169_v26  ;;  %230 = vmatpush.msra.mxu2 %v152_v28  ;;  %v133_v45 = vld [vmem:[%s959_s2 + $0xa8] sm:$0xff]  ;;  %v147_v46 = vld [vmem:[%s959_s2 + $0x118] sm:$0xff]  ;;  %v164_v47 = vld [vmem:[%s959_s2 + $0x1a0] sm:$0xff] }
  0x11   :  { %206 = vmatpush.msra.mxu1 %v137_v27  ;;  %184 = vmatpush.msra.mxu0 %v120_v29  ;;  %v115_v48 = vld [vmem:[%s959_s2 + $0x18] sm:$0xff]  ;;  %v132_v49 = vld [vmem:[%s959_s2 + $0xa0] sm:$0xff]  ;;  %v146_v52 = vld [vmem:[%s959_s2 + $0x110] sm:$0xff] }
  0x12   :  { %253 = vmatpush.msra.mxu3 %v168_v30  ;;  %231 = vmatpush.msra.mxu2 %v151_v32  ;;  %v671_v50 = vld [vmem:[%s960_s1] sm:$0xff]  ;;  %v29_v53 = vld [vmem:[%s961_s0 + $0x10] sm:$0xff]  ;;  %v163_v57 = vld [vmem:[%s959_s2 + $0x198] sm:$0xff] }
  0x13   :  { %207 = vmatpush.msra.mxu1 %v136_v31  ;;  %185 = vmatpush.msra.mxu0 %v119_v33  ;;  %v27_v51 = vld [vmem:[%s961_s0] sm:$0xff]  ;;  %v35_v54 = vadd.s32 1, %v671_v50  ;;  %v45_v56 = vadd.s32 2, %v671_v50  ;;  %v114_v58 = vld [vmem:[%s959_s2 + $0x10] sm:$0xff]  ;;  %v131_v59 = vld [vmem:[%s959_s2 + $0x98] sm:$0xff]  ;;  %v55_v2 = vadd.s32 16, %v671_v50 }
  0x14   :  { %254 = vmatpush.msra.mxu3 %v167_v34  ;;  %232 = vmatpush.msra.mxu2 %v150_v36  ;;  %v39_v55 = vld [vmem:[%s961_s0 + $0x20] sm:$0xff]  ;;  %vm31_vm0 = vcmp.gt.f32.partialorder %v29_v53, %v27_v51  ;;  %v145_v60 = vld [vmem:[%s959_s2 + $0x108] sm:$0xff]  ;;  %v162_v61 = vld [vmem:[%s959_s2 + $0x190] sm:$0xff]  ;;  %v65_v3 = vadd.s32 17, %v671_v50  ;;  %v75_v21 = vadd.s32 18, %v671_v50  ;;  %v85_v26 = vadd.s32 32, %v671_v50 }
  0x15   :  { %208 = vmatpush.msra.mxu1 %v135_v35  ;;  %186 = vmatpush.msra.mxu0 %v118_v37  ;;  %v130_v62 = vld [vmem:[%s959_s2 + $0x90] sm:$0xff]  ;;  %v33_v63 = vsel %vm31_vm0, %v29_v53, %v27_v51  ;;  %v37_v0 = vsel %vm31_vm0, %v35_v54, %v671_v50  ;;  %v714_v4 = vld [vmem:[%s960_s1 + $0x8] sm:$0xff]  ;;  %v30_v6 = vld [vmem:[%s961_s0 + $0x18] sm:$0xff]  ;;  %v95_v36 = vadd.s32 33, %v671_v50 }
  0x16   :  { %255 = vmatpush.msra.mxu3 %v166_v38  ;;  %233 = vmatpush.msra.mxu2 %v149_v40  ;;  %v49_v1 = vld [vmem:[%s961_s0 + $0x30] sm:$0xff]  ;;  %vm41_vm1 = vcmp.gt.f32.partialorder %v39_v55, %v33_v63  ;;  %v28_v5 = vld [vmem:[%s961_s0 + $0x8] sm:$0xff]  ;;  %v144_v8 = vld [vmem:[%s959_s2 + $0x100] sm:$0xff]  ;;  %v36_v11 = vadd.s32 1, %v714_v4  ;;  %v46_v17 = vadd.s32 2, %v714_v4  ;;  %v56_v27 = vadd.s32 16, %v714_v4 }
  0x17   :  { %209 = vmatpush.msra.mxu1 %v134_v39  ;;  %187 = vmatpush.msra.mxu0 %v117_v41  ;;  %v113_v7 = vld [vmem:[%s959_s2 + $0x8] sm:$0xff]  ;;  %v43_v9 = vsel %vm41_vm1, %v39_v55, %v33_v63  ;;  %v47_v10 = vsel %vm41_vm1, %v45_v56, %v37_v0  ;;  %vm32_vm2 = vcmp.gt.f32.partialorder %v30_v6, %v28_v5  ;;  %v112_v14 = vld [vmem:[%s959_s2] sm:$0xff]  ;;  %v50_v23 = vld [vmem:[%s961_s0 + $0x38] sm:$0xff]  ;;  %v66_v34 = vadd.s32 17, %v714_v4 }
  0x18   :  { %256 = vmatpush.msra.mxu3 %v165_v43  ;;  %234 = vmatpush.msra.mxu2 %v148_v42  ;;  %v40_v12 = vld [vmem:[%s961_s0 + $0x28] sm:$0xff]  ;;  %vm51_vm3 = vcmp.gt.f32.partialorder %v49_v1, %v43_v9  ;;  %v34_v16 = vsel %vm32_vm2, %v30_v6, %v28_v5  ;;  %v59_v20 = vld [vmem:[%s961_s0 + $0x40] sm:$0xff]  ;;  %v38_v22 = vsel %vm32_vm2, %v36_v11, %v714_v4  ;;  %v755_v24 = vld [vmem:[%s961_s0 + $0x70] sm:$0xff]  ;;  %v76_v42 = vadd.s32 18, %v714_v4 }
  0x19   :  { %210 = vmatpush.msra.mxu1 %v133_v45  ;;  %188 = vmatpush.msra.mxu0 %v116_v44  ;;  %v161_v13 = vld [vmem:[%s959_s2 + $0x188] sm:$0xff]  ;;  %v53_v18 = vsel %vm51_vm3, %v49_v1, %v43_v9  ;;  %v57_v19 = vsel %vm51_vm3, %v55_v2, %v47_v10  ;;  %v160_v25 = vld [vmem:[%s959_s2 + $0x180] sm:$0xff]  ;;  %vm42_vm5 = vcmp.gt.f32.partialorder %v40_v12, %v34_v16  ;;  %v69_v31 = vld [vmem:[%s961_s0 + $0x50] sm:$0xff]  ;;  %v86_v44 = vadd.s32 32, %v714_v4 }
  0x1a   :  { %257 = vmatpush.msra.mxu3 %v164_v47  ;;  %235 = vmatpush.msra.mxu2 %v147_v46  ;;  %v129_v15 = vld [vmem:[%s959_s2 + $0x88] sm:$0xff]  ;;  %vm61_vm4 = vcmp.gt.f32.partialorder %v59_v20, %v53_v18  ;;  %v765_v30 = vld [vmem:[%s961_s0 + $0x80] sm:$0xff]  ;;  %v44_v33 = vsel %vm42_vm5, %v40_v12, %v34_v16  ;;  %v48_v37 = vsel %vm42_vm5, %v46_v17, %v38_v22  ;;  %v96_v55 = vadd.s32 33, %v714_v4  ;;  %v806_v56 = vld [vmem:[%s961_s0 + $0x78] sm:$0xff] }
  0x1b   :  { %211 = vmatpush.msra.mxu1 %v132_v49  ;;  %189 = vmatpush.msra.mxu0 %v115_v48  ;;  %v63_v28 = vsel %vm61_vm4, %v59_v20, %v53_v18  ;;  %v67_v29 = vsel %vm61_vm4, %v65_v3, %v57_v19  ;;  %v79_v32 = vld [vmem:[%s961_s0 + $0x60] sm:$0xff]  ;;  %vm52_vm7 = vcmp.gt.f32.partialorder %v50_v23, %v44_v33  ;;  %v60_v41 = vld [vmem:[%s961_s0 + $0x48] sm:$0xff]  ;;  %v70_v49 = vld [vmem:[%s961_s0 + $0x58] sm:$0xff]  ;;  %vm310_vm4 = vcmask 261120  }
  0x1c   :  { %258 = vmatpush.msra.mxu3 %v163_v57  ;;  %236 = vmatpush.msra.mxu2 %v146_v52  ;;  %v128_v35 = vld [vmem:[%s959_s2 + $0x80] sm:$0xff]  ;;  %vm71_vm6 = vcmp.gt.f32.partialorder %v69_v31, %v63_v28  ;;  %v54_v40 = vsel %vm52_vm7, %v50_v23, %v44_v33  ;;  %v58_v43 = vsel %vm52_vm7, %v56_v27, %v48_v37  ;;  %v80_v51 = vld [vmem:[%s961_s0 + $0x68] sm:$0xff]  ;;  %v324_v6 = vld [vmem:[%s963_s3 + $0x38] sm:$0xff]  ;;  %vm313_vm5 = vcmask 523264  }
  0x1d   :  { %212 = vmatpush.msra.mxu1 %v131_v59  ;;  %190 = vmatpush.msra.mxu0 %v114_v58  ;;  %v73_v38 = vsel %vm71_vm6, %v69_v31, %v63_v28  ;;  %v77_v39 = vsel %vm71_vm6, %v75_v21, %v67_v29  ;;  %vm62_vm9 = vcmp.gt.f32.partialorder %v60_v41, %v54_v40  ;;  %v811_v57 = vld [vmem:[%s961_s0 + $0x88] sm:$0xff]  ;;  %v474_v63 = vld [vmem:[%s962_s5] ss:$0 sm:$0xff]  ;;  %vm330_vm6 = vcmask 785408  }
  0x1e   :  { %259 = vmatpush.msra.mxu3 %v162_v61  ;;  %237 = vmatpush.msra.mxu2 %v145_v60  ;;  %vm81_vm8 = vcmp.gt.f32.partialorder %v79_v32, %v73_v38  ;;  %v64_v47 = vsel %vm62_vm9, %v60_v41, %v54_v40  ;;  %v68_v48 = vsel %vm62_vm9, %v66_v34, %v58_v43  ;;  %v328_v61 = vld [vmem:[%s963_s3 + $0x58] sm:$0xff]  ;;  %v326_v0 = vld [vmem:[%s963_s3 + $0x48] sm:$0xff]  ;;  %v325_v2 = vld [vmem:[%s963_s3 + $0x40] sm:$0xff] }
  0x1f   :  { %213 = vmatpush.msra.mxu1 %v130_v62  ;;  %191 = vmatpush.msra.mxu0 %v113_v7  ;;  %v787_v45 = vsel %vm81_vm8, %v79_v32, %v73_v38  ;;  %v87_v46 = vsel %vm81_vm8, %v85_v26, %v77_v39  ;;  %vm72_vm11 = vcmp.gt.f32.partialorder %v70_v49, %v64_v47  ;;  %v327_v62 = vld [vmem:[%s963_s3 + $0x50] sm:$0xff] }
  0x20   :  { %260 = vmatpush.msra.mxu3 %v161_v13  ;;  %238 = vmatpush.msra.mxu2 %v144_v8  ;;  %vm91_vm10 = vcmp.gt.f32.partialorder %v755_v24, %v787_v45  ;;  %v74_v53 = vsel %vm72_vm11, %v70_v49, %v64_v47  ;;  %v78_v54 = vsel %vm72_vm11, %v76_v42, %v68_v48  ;;  %v271_v8 = vlaneseq  ;;  %v321_v47 = vld [vmem:[%s963_s3 + $0x20] sm:$0xff]  ;;  %v320_v48 = vld [vmem:[%s963_s3 + $0x18] sm:$0xff] }
  0x21   :  { %214 = vmatpush.msra.mxu1 %v129_v15  ;;  %192 = vmatpush.msra.mxu0 %v112_v14  ;;  %v800_v52 = vsel %vm91_vm10, %v95_v36, %v87_v46  ;;  %vm82_vm12 = vcmp.gt.f32.partialorder %v80_v51, %v74_v53  ;;  %v322_v46 = vld [vmem:[%s963_s3 + $0x28] sm:$0xff] }
  0x22   :  { %239 = vmatmul.f32.vlgmr.msra.gmra.mxu2 %v755_v24  ;;  %261 = vmatpush.msra.mxu3 %v160_v25  ;;  %v813_v58 = vsel %vm82_vm12, %v80_v51, %v74_v53  ;;  %v88_v59 = vsel %vm82_vm12, %v86_v44, %v78_v54  ;;  %v272_v12 = vshrl.u32 %v271_v8, 7  ;;  %v323_v44 = vld [vmem:[%s963_s3 + $0x30] sm:$0xff]  ;;  %v318_v51 = vld [vmem:[%s963_s3 + $0x8] sm:$0xff]  ;;  %v317_v53 = vld [vmem:[%s963_s3] sm:$0xff] }
  0x23   :  { %193 = vmatmul.f32.vlgmr.msra.gmra.mxu0 %v59_v20  ;;  %262 = vmatmul.f32.vlgmr.msra.gmra.mxu3 %v765_v30  ;;  %vm92_vm13 = vcmp.gt.f32.partialorder %v806_v56, %v813_v58  ;;  %v371_v54 = vld [vmem:[%s964_s4 + $0x38] sm:$0xff]  ;;  %v366_v8 = vld [vmem:[%s964_s4 + $0x10] sm:$0xff] }
  0x24   :  { %215 = vmatpush.msra.mxu1 %v128_v35  ;;  %v821_v60 = vsel %vm92_vm13, %v96_v55, %v88_v59  ;;  %341 = vmatpush.msrb.mxu0 %v328_v61  ;;  %v273_v19 = vadd.s32 8, %v272_v12  ;;  %v274_v23 = vand.u32 7, %v272_v12  ;;  %vm289_vm14 = vcmp.lt.s32.totalorder %v272_v12, 7  ;;  %v370_v55 = vld [vmem:[%s964_s4 + $0x30] sm:$0xff]  ;;  %v369_v59 = vld [vmem:[%s964_s4 + $0x28] sm:$0xff] }
  0x25   :  { %216 = vmatmul.f32.vlgmr.msra.gmra.mxu1 %v69_v31  ;;  %460 = vmatpush.msrb.mxu3 %v328_v61  ;;  %vm280_vm1 = vcmp.lt.s32.totalorder %v272_v12, 1  ;;  %v368_v61 = vld [vmem:[%s964_s4 + $0x20] sm:$0xff]  ;;  %v105_v12 = vadd.s32 34, %v671_v50 }
  0x26   :  { %342 = vmatpush.msrb.mxu0 %v327_v62  ;;  %v275_v25 = vand.u32 7, %v273_v19  ;;  %vm842_vm15 = vcmp.eq.s32.totalorder %v274_v23, 7  ;;  %vm846_vm0 = vcmp.eq.s32.totalorder %v274_v23, 0  ;;  %418 = vmatpush.msrb.mxu2 %v371_v54 }
  0x27   :  { %461 = vmatpush.msrb.mxu3 %v327_v62  ;;  %395 = vmatpush.msrb.mxu1 %v370_v55  ;;  %v367_v62 = vld [vmem:[%s964_s4 + $0x18] sm:$0xff] }
  0x28   :  { %343 = vmatpush.msrb.mxu0 %v326_v0  ;;  %vm850_vm2 = vcmp.eq.s32.totalorder %v275_v25, 0  ;;  %vm286_vm3 = vcmp.eq.s32.totalorder %v275_v25, 7  ;;  %419 = vmatpush.msrb.mxu2 %v369_v59 }
  0x29   :  { %462 = vmatpush.msrb.mxu3 %v326_v0  ;;  %396 = vmatpush.msrb.mxu1 %v368_v61 }
  0x2a   :  { %242 = vmatmul.f32.gmra.mxu2 %v806_v56  ;;  %344 = vmatpush.msrb.mxu0 %v325_v2 }
  0x2b   :  { %196 = vmatmul.f32.gmra.mxu0 %v60_v41  ;;  %265 = vmatmul.f32.gmra.mxu3 %v811_v57 }
  0x2c   :  { %463 = vmatpush.msrb.mxu3 %v325_v2  ;;  %345 = vmatpush.msrb.mxu0 %v324_v6 }
  0x2d   :  { %219 = vmatmul.f32.gmra.mxu1 %v70_v49  ;;  %v319_v49 = vld [vmem:[%s963_s3 + $0x10] sm:$0xff]  ;;  %420 = vmatpush.msrb.mxu2 %v367_v62 }
  0x2e   :  { %464 = vmatpush.msrb.mxu3 %v324_v6  ;;  %346 = vmatpush.msrb.mxu0 %v323_v44 }
  0x2f   :  { %397 = vmatpush.msrb.mxu1 %v366_v8 }
  0x30   :  { %465 = vmatpush.msrb.mxu3 %v323_v44  ;;  %347 = vmatpush.msrb.mxu0 %v322_v46 }
  0x32   :  { %466 = vmatpush.msrb.mxu3 %v322_v46  ;;  %348 = vmatpush.msrb.mxu0 %v321_v47 }
  0x34   :  { %467 = vmatpush.msrb.mxu3 %v321_v47  ;;  %349 = vmatpush.msrb.mxu0 %v320_v48 }
  0x36   :  { %468 = vmatpush.msrb.mxu3 %v320_v48  ;;  %350 = vmatpush.msrb.mxu0 %v319_v49 }
  0x38   :  { %469 = vmatpush.msrb.mxu3 %v319_v49  ;;  %351 = vmatpush.msrb.mxu0 %v318_v51 }
  0x3a   :  { %470 = vmatpush.msrb.mxu3 %v318_v51  ;;  %352 = vmatpush.msrb.mxu0 %v317_v53 }
  0x3c   :  { %471 = vmatpush.msrb.mxu3 %v317_v53 }
  0xa0   :  { %v194_v1 = vpop.f32.mrf.mxu0 }
  0xa1   :  { %v195_v3 = vadd.f32 %v474_v63, %v194_v1 }
  0xa2   :  { %v217_v5 = vpop.f32.mrf.mxu1 }
  0xa3   :  { %v218_v7 = vadd.f32 %v217_v5, %v195_v3 }
  0xa5   :  { %v240_v9 = vpop.f32.mrf.mxu2 }
  0xa6   :  { %v241_v10 = vadd.f32 %v240_v9, %v218_v7  ;;  %v263_v11 = vpop.f32.mrf.mxu3  ;;  %v365_v9 = vld [vmem:[%s964_s4 + $0x8] sm:$0xff] }
  0xa7   :  { %421 = vmatpush.msrb.mxu2 %v365_v9 }
  0xa8   :  { %v264_v13 = vadd.f32 %v263_v11, %v241_v10  ;;  %v197_v14 = vpop.f32.mrf.mxu0  ;;  %v364_v10 = vld [vmem:[%s964_s4] sm:$0xff]  ;;  %v93_v11 = vsel %vm91_vm10, %v755_v24, %v787_v45  ;;  %v94_v45 = vsel %vm92_vm13, %v806_v56, %v813_v58 }
  0xa9   :  { %v198_v15 = vadd.f32 %v474_v63, %v197_v14  ;;  %398 = vmatpush.msrb.mxu1 %v364_v10  ;;  %vm101_vm7 = vcmp.gt.f32.partialorder %v765_v30, %v93_v11  ;;  %vm102_vm8 = vcmp.gt.f32.partialorder %v811_v57, %v94_v45 }
  0xaa   :  { %v269_v16 = vmax.f32 %v264_v13, 0.0  ;;  %v220_v17 = vpop.f32.mrf.mxu1  ;;  %v103_v13 = vsel %vm101_vm7, %v765_v30, %v93_v11  ;;  %v107_v14 = vsel %vm101_vm7, %v105_v12, %v800_v52  ;;  %v106_v52 = vadd.s32 34, %v714_v4 }
  0xab   :  { %v221_v18 = vadd.f32 %v220_v17, %v198_v15  ;;  %109 = vst [vmem:[%s965_s7] sm:$0xff] %v107_v14  ;;  %v475_v15 = vld [vmem:[%s962_s5 + $0x1] ss:$0 sm:$0xff] }
  0xac   :  { %296 = vrot.lane.b32.xlu0 %v269_v16, %s476_s16  ;;  %v278_v32 = vrot.slane %v269_v16, 7  ;;  %v287_v33 = vrot.slane %v269_v16, 1  ;;  %v108_v19 = vsel %vm102_vm8, %v106_v52, %v821_v60 }
  0xad   :  { %v243_v20 = vpop.f32.mrf.mxu2  ;;  %110 = vst [vmem:[%s965_s7 + $0x8] sm:$0xff] %v108_v19 }
  0xae   :  { %v244_v21 = vadd.f32 %v243_v20, %v221_v18  ;;  %v266_v22 = vpop.f32.mrf.mxu3  ;;  %v455_v20 = vld [vmem:[%s962_s5 + $0x2] ss:$4 sm:$0x3] }
  0xaf   :  { %v374_v58 = vperm.slane %v455_v20, 1 }
  0xb0   :  { %v267_v26 = vadd.f32 %v266_v22, %v244_v21  ;;  %v373_v21 = vperm.slane %v455_v20, 0 }
  0xb2   :  { %v270_v27 = vmax.f32 %v267_v26, 0.0 }
  0xb4   :  { %v279_v34 = vrot.slane %v270_v27, 7  ;;  %v288_v35 = vrot.slane %v270_v27, 1  ;;  %298 = vrot.lane.b32.xlu1 %v270_v27, %s476_s16 }
  0xb6   :  { %v290_v36 = vsel %vm289_vm14, %v287_v33, %v288_v35  ;;  %v282_v37 = vsel %vm280_vm1, %v279_v34, %v278_v32  ;;  %v281_v38 = vsel %vm280_vm1, %v278_v32, %v279_v34  ;;  %v291_v42 = vsel %vm289_vm14, %v288_v35, %v287_v33 }
  0xb7   :  { %v292_v39 = vsel %vm842_vm15, 0.0, %v290_v36  ;;  %v283_v40 = vsel %vm846_vm0, 0.0, %v282_v37  ;;  %v284_v41 = vsel %vm850_vm2, 0.0, %v281_v38  ;;  %v293_v43 = vsel %vm286_vm3, 0.0, %v291_v42 }
  0xb8   :  { %304 = vrot.lane.b32.xlu0 %v292_v39, %s477_s17  ;;  %v104_v32 = vsel %vm102_vm8, %v811_v57, %v94_v45 }
  0xbc   :  { %306 = vrot.lane.b32.xlu1 %v293_v43, %s477_s17 }
 0x11e   :  { %v297_v63 = vpop.permute.xlu0 %296 }
 0x11f   :  { %v311_v1 = vsel %vm310_vm4, %v283_v40, %v297_v63 }
 0x126   :  { %v299_v0 = vpop.permute.xlu1 %298 }
 0x127   :  { %v312_v5 = vsel %vm310_vm4, %v284_v41, %v299_v0 }
 0x12a   :  { %v305_v2 = vpop.permute.xlu0 %304 }
 0x12b   :  { %v314_v3 = vsel %vm313_vm5, %v311_v1, %v305_v2 }
 0x12c   :  { %453 = vmatmul.msk.f32.vlgmr.msrb.gmra.mxu0 %vm330_vm6, %v314_v3 }
 0x12e   :  { %v307_v6 = vpop.permute.xlu1 %306 }
 0x12f   :  { %v315_v7 = vsel %vm313_vm5, %v312_v5, %v307_v6 }
 0x130   :  { %454 = vmatmul.msk.f32.vlgmr.msrb.gmra.mxu3 %vm330_vm6, %v315_v7 }
 0x1a9   :  { %v354_v16 = vpop.f32.mrf.mxu0 }
 0x1aa   :  { %v355_v17 = vadd.f32 %v475_v15, %v354_v16 }
 0x1ac   :  { %v360_v18 = vmax.f32 %v355_v17, 0.0 }
 0x1ae   :  { %456 = vmatmul.msk.f32.vlgmr.msrb.gmra.mxu1 %vm310_vm4, %v360_v18  ;;  %458 = vmatmul.msk.f32.vlgmr.msrb.gmra.mxu2 %vm310_vm4, %v360_v18 }
 0x1b3   :  { %v357_v50 = vpop.f32.mrf.mxu3 }
 0x1b4   :  { %v358_v24 = vadd.f32 %v475_v15, %v357_v50 }
 0x1b6   :  { %v361_v30 = vmax.f32 %v358_v24, 0.0 }
 0x1b8   :  { %457 = vmatmul.msk.f32.gmra.mxu1 %vm310_vm4, %v361_v30  ;;  %459 = vmatmul.msk.f32.gmra.mxu2 %vm310_vm4, %v361_v30 }
 0x22b   :  { %v400_v22 = vpop.f32.mrf.mxu1 }
 0x22c   :  { %v401_v23 = vadd.f32 %v400_v22, %v373_v21 }
 0x22e   :  { %v429_v56 = vmax.f32 %v401_v23, 0.0 }
 0x230   :  { %v433_v4 = vadd.f32 %v429_v56, %v103_v13 }
 0x231   :  { %v423_v25 = vpop.f32.mrf.mxu2 }
 0x232   :  { %v437_v26 = vmax.f32 %v433_v4, 0.0  ;;  %v424_v27 = vadd.f32 %v423_v25, %v374_v58 }
 0x234   :  { %441 = vst [vmem:[%s966_s6] sm:$0xff] %v437_v26  ;;  %v430_v60 = vmax.f32 %v424_v27, 0.0 }
 0x235   :  { %v403_v28 = vpop.f32.mrf.mxu1 }
 0x236   :  { %v438_v29 = vmax.f32 %v430_v60, 0.0  ;;  %v404_v31 = vadd.f32 %v403_v28, %v373_v21 }
 0x238   :  { %442 = vst [vmem:[%s966_s6 + $0x8] sm:$0xff] %v438_v29  ;;  %v431_v33 = vmax.f32 %v404_v31, 0.0 }
 0x23a   :  { %v435_v34 = vadd.f32 %v431_v33, %v104_v32 }
 0x23b   :  { %v426_v35 = vpop.f32.mrf.mxu2 }
 0x23c   :  { %v439_v36 = vmax.f32 %v435_v34, 0.0  ;;  %v427_v37 = vadd.f32 %v426_v35, %v374_v58 }
 0x23e   :  { %443 = vst [vmem:[%s966_s6 + $0x10] sm:$0xff] %v439_v36  ;;  %v432_v38 = vmax.f32 %v427_v37, 0.0 }
 0x240   :  { %v440_v39 = vmax.f32 %v432_v38, 0.0 }
 0x242   :  { %444 = vst [vmem:[%s966_s6 + $0x18] sm:$0xff] %v440_v39 }

</bundles_post_ra>
